<compile_context>
chip_gen: v7x
topology: tpu7x:2x2x1
jax: 0.10.0
libtpu: 0.0.40
codegen_flags: <defaults>
</compile_context>

<pallas_src>
import jax
import jax.numpy as jnp
from jax.experimental import pallas as pl
from jax.experimental.pallas import tpu as pltpu


def sepconv_rows_kernel(x_ref, m_ref, b_ref, o_ref):
    # x_ref: (1, 1, TH+2, (W+2)*Cin)  bf16  halo'd row tile of one image
    # m_ref: (3, (W+2)*Cin, W*Cout)   bf16  fused depthwise*pointwise banded weights
    # b_ref: (1, W*Cout)              f32   fused bias, tiled over W
    # o_ref: (1, TH, W*Cout)          f32   lane-dense output rows
    th = o_ref.shape[1]
    xr = x_ref[0, 0]                                           # (TH+2, RW)
    acc = jnp.dot(xr[0:th, :], m_ref[0], preferred_element_type=jnp.float32)
    acc = acc + jnp.dot(xr[1:th + 1, :], m_ref[1],
                        preferred_element_type=jnp.float32)
    acc = acc + jnp.dot(xr[2:th + 2, :], m_ref[2],
                        preferred_element_type=jnp.float32)
    o_ref[0] = (acc + b_ref[...]).astype(o_ref.dtype)


def sepconv_pallas(x_nchw, dw_w, dw_b, pw_w, pw_b, *, max_tile_h=512):
    """x_nchw: (N, Cin, H, W); dw_w: (3,3,Cin); dw_b: (Cin,);
       pw_w: (Cin, Cout); pw_b: (Cout,)."""
    N, Cin, H, W = x_nchw.shape
    Cout = pw_w.shape[1]
    RW = (W + 2) * Cin                       # flattened padded-row width (matmul K)
    NC = W * Cout                            # flattened output-row width (matmul N, lanes)

    # ---- row tiling: whole H when it fits, else 512-row tiles; pad ragged H.
    TH = min(-(-H // 8) * 8, max_tile_h)     # multiple of 8, capped
    Hp = -(-H // TH) * TH                    # padded height (multiple of TH)
    nH = Hp // TH

    # ---- fused weights (tiny, wrapper-side, exact algebra) ------------------
    # Wf[dh, dw, ci, co] = dw_w[dh, dw, ci] * pw_w[ci, co]
    Wf = dw_w[:, :, :, None] * pw_w[None, None, :, :]          # (3, 3, Cin, Cout)
    # Banded matrices: M[dh, (w+dw)*Cin + ci, w*Cout + co] = Wf[dh, dw, ci, co]
    T = jnp.zeros((3, W + 2, W, Cin, Cout), jnp.float32)
    w_idx = jnp.arange(W)
    for dw in range(3):
        T = T.at[:, w_idx + dw, w_idx, :, :].set(Wf[:, dw][:, None, :, :])
    M = T.transpose(0, 1, 3, 2, 4).reshape(3, RW, NC).astype(jnp.bfloat16)
    b_fused = dw_b @ pw_w + pw_b                               # (Cout,) exact, stays f32
    b_row = jnp.tile(b_fused, (W,)).reshape(1, NC).astype(jnp.float32)

    # ---- input: bf16 rows flattened to (W+2)*Cin lanes ----------------------
    x_nhwc = jnp.transpose(x_nchw.astype(jnp.bfloat16), (0, 2, 3, 1))
    xp = jnp.pad(x_nhwc, ((0, 0), (1, 1 + (Hp - H)), (1, 1), (0, 0)))
    x_rows = xp.reshape(N, Hp + 2, RW)                         # (N, Hp+2, RW)

    if nH == 1:
        # No halo duplication, no gather: just a zero-copy reshape.
        x_tiles = x_rows[:, None]                              # (N, 1, Hp+2, RW)
    else:
        # TODO(synk): production-H path — replace this halo gather with
        # pl.Element row windows or a pl.ANY ref + make_async_copy so the input
        # is not duplicated through HBM (halo overhead here is only 2/TH).
        row_idx = jnp.arange(nH)[:, None] * TH + jnp.arange(TH + 2)[None, :]
        x_tiles = x_rows[:, row_idx, :]                        # (N, nH, TH+2, RW)

    # ---- explicit VMEM budget, sized against v7x's 64 MiB physical VMEM -----
    tile_bytes = 2 * ((TH + 2) * RW * 2 + TH * NC * 4)         # dbl-buffered x / out
    weight_bytes = 2 * (3 * RW * NC * 2 + NC * 4)              # dbl-buffered M / bias
    vmem_limit = int(min(max(4 * (tile_bytes + weight_bytes), 32 << 20), 48 << 20))

    out_rows = pl.pallas_call(
        sepconv_rows_kernel,
        out_shape=jax.ShapeDtypeStruct((N, Hp, NC), jnp.float32),
        grid=(N, nH),
        in_specs=[
            pl.BlockSpec((1, 1, TH + 2, RW), lambda n, h: (n, h, 0, 0)),
            # Constant index_map -> fetched once.  At production W, additionally
            # column-tile M and single-buffer it (pipeline_mode=pl.Buffered(1)).
            pl.BlockSpec((3, RW, NC), lambda n, h: (0, 0, 0)),
            pl.BlockSpec((1, NC), lambda n, h: (0, 0)),
        ],
        out_specs=pl.BlockSpec((1, TH, NC), lambda n, h: (n, h, 0)),
        compiler_params=pltpu.CompilerParams(
            dimension_semantics=("parallel", "parallel"),
            vmem_limit_bytes=vmem_limit),
    )(x_tiles, M, b_row)

    out_nhwc = out_rows[:, :H].reshape(N, H, W, Cout)
    return jnp.transpose(out_nhwc, (0, 3, 1, 2))               # -> NCHW


def reference_sepconv(x_nchw, dw_w, dw_b, pw_w, pw_b):
    """Pure-JAX f32 reference using lax.conv (matches PyTorch Conv2d semantics)."""
    Cin = x_nchw.shape[1]
    Cout = pw_w.shape[1]
    dw_oihw = jnp.transpose(dw_w, (2, 0, 1))[:, None, :, :]    # (Cin,1,3,3), groups=Cin
    out1 = jax.lax.conv_general_dilated(
        x_nchw, dw_oihw, window_strides=(1, 1), padding=((1, 1), (1, 1)),
        dimension_numbers=("NCHW", "OIHW", "NCHW"), feature_group_count=Cin)
    out1 = out1 + dw_b.reshape(1, Cin, 1, 1)
    pw_oihw = jnp.transpose(pw_w, (1, 0))[:, :, None, None]    # (Cout,Cin,1,1)
    out = jax.lax.conv_general_dilated(
        out1, pw_oihw, window_strides=(1, 1), padding="VALID",
        dimension_numbers=("NCHW", "OIHW", "NCHW"))
    return out + pw_b.reshape(1, Cout, 1, 1)


if __name__ == "__main__":
    N, Cin, Cout, H, W = 2, 4, 8, 16, 16

    key = jax.random.PRNGKey(0)
    k_x, k_dw, k_db, k_pw, k_pb = jax.random.split(key, 5)

    x = jax.random.normal(k_x, (N, Cin, H, W), jnp.float32)

    # Parameter shapes follow nn.Conv2d in __init__:
    #   conv1.weight: (Cin, 1, 3, 3), groups=Cin  -> stored here as (3, 3, Cin)
    #   conv1.bias  : (Cin,)
    #   conv2.weight: (Cout, Cin, 1, 1)           -> stored here as (Cin, Cout)
    #   conv2.bias  : (Cout,)
    dw_w = 0.1 * jax.random.normal(k_dw, (3, 3, Cin), jnp.float32)
    dw_b = 0.1 * jax.random.normal(k_db, (Cin,), jnp.float32)
    pw_w = 0.1 * jax.random.normal(k_pw, (Cin, Cout), jnp.float32)
    pw_b = 0.1 * jax.random.normal(k_pb, (Cout,), jnp.float32)

    out = sepconv_pallas(x, dw_w, dw_b, pw_w, pw_b)
    out = jax.block_until_ready(out)

    ref = reference_sepconv(x, dw_w, dw_b, pw_w, pw_b)
    assert out.shape == (N, Cout, H, W)
    # bf16 inputs / fused weights with f32 accumulation vs. f32 two-stage conv
    # reference -> relaxed tolerance.
    assert jnp.allclose(out, ref, atol=2e-2, rtol=2e-2)

    print("KERNEL_OK")
</pallas_src>

<mosaic_0001>
module attributes {stable_mosaic.version = 11 : i64} {
  func.func @sepconv_rows_kernel(%arg0: i32, %arg1: i32, %arg2: memref<1x1x18x72xbf16, #tpu.memory_space<vmem>>, %arg3: memref<3x72x128xbf16, #tpu.memory_space<vmem>>, %arg4: memref<1x128xf32, #tpu.memory_space<vmem>>, %arg5: memref<1x16x128xf32, #tpu.memory_space<vmem>>) attributes {dimension_semantics = [#tpu.dimension_semantics<parallel>, #tpu.dimension_semantics<parallel>], iteration_bounds = array<i64: 2, 1>, scalar_prefetch = 0 : i64, scratch_operands = 0 : i64, tpu.core_type = #tpu.core_type<tc>, window_params = [{transform_indices = @transform_0, window_bounds = array<i64: 1, 1, 18, 72>}, {pipeline_mode = #tpu.pipeline_mode<synchronous>, transform_indices = @transform_1, window_bounds = array<i64: 3, 72, 128>}, {pipeline_mode = #tpu.pipeline_mode<synchronous>, transform_indices = @transform_2, window_bounds = array<i64: 1, 128>}, {transform_indices = @transform_3, window_bounds = array<i64: 1, 16, 128>}]} {
    %c0 = arith.constant 0 : index
    %c0_0 = arith.constant 0 : index
    %c0_1 = arith.constant 0 : index
    %c0_2 = arith.constant 0 : index
    %0 = vector.load %arg2[%c0, %c0_0, %c0_1, %c0_2] : memref<1x1x18x72xbf16, #tpu.memory_space<vmem>>, vector<1x1x18x72xbf16>
    %1 = vector.shape_cast %0 : vector<1x1x18x72xbf16> to vector<18x72xbf16>
    %2 = vector.extract_strided_slice %1 {offsets = [0, 0], sizes = [16, 72], strides = [1, 1]} : vector<18x72xbf16> to vector<16x72xbf16>
    %c0_3 = arith.constant 0 : index
    %c0_4 = arith.constant 0 : index
    %c0_5 = arith.constant 0 : index
    %3 = vector.load %arg3[%c0_3, %c0_4, %c0_5] : memref<3x72x128xbf16, #tpu.memory_space<vmem>>, vector<1x72x128xbf16>
    %4 = vector.shape_cast %3 : vector<1x72x128xbf16> to vector<72x128xbf16>
    %cst = arith.constant dense<0.000000e+00> : vector<16x128xf32>
    %5 = tpu.matmul %2, %4, %cst {dimension_numbers = #tpu.dot_dimension_numbers<[1], [0], [0], [1], [0, 0, 1, 1], [], []>} : vector<16x72xbf16>, vector<72x128xbf16>, vector<16x128xf32> -> vector<16x128xf32>
    %6 = vector.extract_strided_slice %1 {offsets = [1, 0], sizes = [16, 72], strides = [1, 1]} : vector<18x72xbf16> to vector<16x72xbf16>
    %c1 = arith.constant 1 : index
    %c0_6 = arith.constant 0 : index
    %c0_7 = arith.constant 0 : index
    %7 = vector.load %arg3[%c1, %c0_6, %c0_7] : memref<3x72x128xbf16, #tpu.memory_space<vmem>>, vector<1x72x128xbf16>
    %8 = vector.shape_cast %7 : vector<1x72x128xbf16> to vector<72x128xbf16>
    %cst_8 = arith.constant dense<0.000000e+00> : vector<16x128xf32>
    %9 = tpu.matmul %6, %8, %cst_8 {dimension_numbers = #tpu.dot_dimension_numbers<[1], [0], [0], [1], [0, 0, 1, 1], [], []>} : vector<16x72xbf16>, vector<72x128xbf16>, vector<16x128xf32> -> vector<16x128xf32>
    %10 = arith.addf %5, %9 : vector<16x128xf32>
    %11 = vector.extract_strided_slice %1 {offsets = [2, 0], sizes = [16, 72], strides = [1, 1]} : vector<18x72xbf16> to vector<16x72xbf16>
    %c2 = arith.constant 2 : index
    %c0_9 = arith.constant 0 : index
    %c0_10 = arith.constant 0 : index
    %12 = vector.load %arg3[%c2, %c0_9, %c0_10] : memref<3x72x128xbf16, #tpu.memory_space<vmem>>, vector<1x72x128xbf16>
    %13 = vector.shape_cast %12 : vector<1x72x128xbf16> to vector<72x128xbf16>
    %cst_11 = arith.constant dense<0.000000e+00> : vector<16x128xf32>
    %14 = tpu.matmul %11, %13, %cst_11 {dimension_numbers = #tpu.dot_dimension_numbers<[1], [0], [0], [1], [0, 0, 1, 1], [], []>} : vector<16x72xbf16>, vector<72x128xbf16>, vector<16x128xf32> -> vector<16x128xf32>
    %15 = arith.addf %10, %14 : vector<16x128xf32>
    %c0_12 = arith.constant 0 : index
    %c0_13 = arith.constant 0 : index
    %16 = vector.load %arg4[%c0_12, %c0_13] : memref<1x128xf32, #tpu.memory_space<vmem>>, vector<1x128xf32>
    %17 = vector.broadcast %16 : vector<1x128xf32> to vector<16x128xf32>
    %18 = arith.addf %15, %17 : vector<16x128xf32>
    %c0_14 = arith.constant 0 : index
    %c0_15 = arith.constant 0 : index
    %c0_16 = arith.constant 0 : index
    %19 = vector.load %arg5[%c0_14, %c0_15, %c0_16] : memref<1x16x128xf32, #tpu.memory_space<vmem>>, vector<1x16x128xf32>
    %20 = vector.shape_cast %19 : vector<1x16x128xf32> to vector<16x128xf32>
    %21 = vector.shape_cast %18 : vector<16x128xf32> to vector<1x16x128xf32>
    tpu.vector_store %arg5[%c0_14, %c0_15, %c0_16], %21 {strides = array<i32>} : memref<1x16x128xf32, #tpu.memory_space<vmem>>, vector<1x16x128xf32>,
    return
  }
  func.func @transform_0(%arg0: i32, %arg1: i32) -> (i32, i32, i32, i32) {
    %c0_i32 = arith.constant 0 : i32
    %c0_i32_0 = arith.constant 0 : i32
    %c0_i32_1 = arith.constant 0 : i32
    return %arg0, %arg1, %c0_i32, %c0_i32_0 : i32, i32, i32, i32
  }
  func.func @transform_1(%arg0: i32, %arg1: i32) -> (i32, i32, i32) {
    %c0_i32 = arith.constant 0 : i32
    %c0_i32_0 = arith.constant 0 : i32
    %c0_i32_1 = arith.constant 0 : i32
    %c0_i32_2 = arith.constant 0 : i32
    return %c0_i32, %c0_i32_0, %c0_i32_1 : i32, i32, i32
  }
  func.func @transform_2(%arg0: i32, %arg1: i32) -> (i32, i32) {
    %c0_i32 = arith.constant 0 : i32
    %c0_i32_0 = arith.constant 0 : i32
    %c0_i32_1 = arith.constant 0 : i32
    return %c0_i32, %c0_i32_0 : i32, i32
  }
  func.func @transform_3(%arg0: i32, %arg1: i32) -> (i32, i32, i32) {
    %c0_i32 = arith.constant 0 : i32
    %c0_i32_0 = arith.constant 0 : i32
    return %arg0, %arg1, %c0_i32 : i32, i32, i32
  }
}

</mosaic_0001>

<bundles_post_ra>
// kernel: tpu_custom_call.1
= control target key start
LH: loop header
LB: loop body
LE: loop exit
PB: predicated region body
PF: predicated region fallthrough
CT: control target
= control target key end

     0   :  { %8 = vsyncpa [#allocation3], 0  ;;  %s1127_s0 = inlined_call_operand.vmem [shape: bf16[2,1,18,72], index: 0, kind: input, shape index: {}]   ;;  %s1128_s1 = inlined_call_operand.hbm [shape: bf16[3,72,128], index: 1, kind: input, shape index: {}]   ;;  %s1129_s2 = inlined_call_operand.vmem [shape: f32[1,128], index: 2, kind: input, shape index: {}]   ;;  %s1130_s3 = inlined_call_operand.hbm [shape: f32[2,16,128], index: 3, kind: output, shape index: {}]  }
   0x1   :  { %9 = vsyncpa [#allocation4], 0 }
   0x2   :  { %11 = vsyncpa [#allocation4 + $0x1], 0  ;;  %s943_s12 = smov 0   ;;  %s945_s13 = smov 0  }
   0x3   :  { %s947_s14 = smov 0   ;;  %s949_s15 = smov 0  }
   0x4   :  { %s951_s16 = smov 0   ;;  %s953_s17 = smov 0  }
   0x5 LB: > { %s617_s18 = sadd.s32 4294967295, %s913_s17   ;;  %s618_s19 = sadd.s32 4294967294, %s913_s17   ;;  %s913_s17 = sphi %s953_s17, %s17_s17   ;;  %s909_s16 = sphi %s951_s16, %s1148_s16   ;;  %s905_s15 = sphi %s949_s15, %s1147_s15   ;;  %s901_s14 = sphi %s947_s14, %s1146_s14   ;;  %s897_s13 = sphi %s945_s13, %s1145_s13   ;;  %s893_s12 = sphi %s943_s12, %s1144_s12  }
   0x6   : > { %s29_s20 = sadd.s32 1, %s909_s16  ;;  %s108_s21 = sadd.s32 1, %s901_s14 }
   0x7   : > { %p31_p0 = scmp.ge.s32.totalorder %s29_s20, 2  ;;  %p118_p1 = scmp.ne.s32.totalorder %s901_s14, %s897_s13 }
   0x8   : > { %p119_p2 = scmp.eq.s32.totalorder %s617_s18, 1  ;;  %p124_p3 = scmp.ne.s32.totalorder %s897_s13, %s893_s12 }
   0x9   : > { %s1150_s20 = smov (%p31_p0, %s29_s20), 0  ;;  %p125_p5 = scmp.eq.s32.totalorder %s618_s19, 1 }
   0xa   : > { %p983_p4 = por %p119_p2, %p118_p1  ;;  %s103_s23 = ssub.s32 %s909_s16, %s1150_s20 }
   0xb   : > { %p619_p6 = scmp.ge.s32.totalorder %s913_s17, 1  ;;  %p106_p7 = scmp.eq.s32.totalorder %s103_s23, 0 }
   0xc   : > { %s1135_s22 = scalar_select %p983_p4, 1, 0 }
   0xd   : > { %p990_p8 = por %p125_p5, %p124_p3  ;;  %p132_p9 = scmp.lt.s32.totalorder %s913_s17, 3 }
   0xe   : > { %s996_s25 = scalar_select %p106_p7, %s901_s14, %s108_s21  }
   0xf   : > { %s1136_s24 = scalar_select %p990_p8, 1, 0 }
  0x10   : > { %p998_p10 = pnand %p619_p6, %p132_p9  ;;  %p1002_p11 = scmp.eq.s32.totalorder %s617_s18, 0 }
  0x11   : > { %s915_s28 = smov [#allocation2]   ;;  %s803_s6 = scalar_lea.hbm %s1128_s1, 1728 }
  0x12   : > { %s1137_s26 = scalar_select %p998_p10, 1, 0 }
  0x13   : > { %s1138_s27 = scalar_select %p1002_p11, 1, 0 }
  0x14   : > { %p720_p12 = pneg %p998_p10  ;;  %s144_s29 = sshll.u32 %s915_s28, 4  ;;  %s145_s29 = int_to_ptr.vmem [resolvable:$true] %s144_s29 }
  0x15   : > { %p804_p0 = scmp.ne.s32.totalorder %s1128_s1, %s803_s6  ;;  %p810_p5 = scmp.lt.u32.totalorder %s803_s6, %s1128_s1 }
  0x16   : > { %p1010_p13 = pnand %p1002_p11, %p720_p12 }
  0x18   : > { %p805_p1 = pneg %p1010_p13 }
  0x1a   : > { %p806_p2 = pnand %p805_p1, %p804_p0 }
  0x1c   : > { %p807_p3 = pneg %p806_p2 }
  0x1e   : > { %p812_p6 = pnand %p810_p5, %p807_p3 }
  0x20   : > { %815 = shalt.err (!%p812_p6)
}
  0x21   : > { %s816_s11 = scalar_lea.vmem %s145_s29, 1728  ;;  %p824_p8 = scmp.lt.s32.totalorder %s145_s29, %s145_s29 }
  0x22   : > { %p817_p7 = scmp.ne.s32.totalorder %s145_s29, %s816_s11  ;;  %p825_p4 = scmp.lt.s32.totalorder %s816_s11, %s816_s11 }
  0x24   : > { %p819_p9 = pnand %p817_p7, %p805_p1  ;;  %p826_p11 = por %p825_p4, %p824_p8 }
  0x26   : > { %p820_p12 = pneg %p819_p9 }
  0x28   : > { %p827_p10 = pnand %p826_p11, %p820_p12 }
  0x2a   : > { %830 = shalt.err (!%p827_p10)
}
  0x2b   : > { %s916_s18 = smov 64   ;;  %s917_s19 = smov 4  }
  0x2c   : > { %723 = dma.hbm_to_vmem [thread:$0]  (!%p1010_p13), %s1128_s1, 1728, %s145_s29, [#allocation3], %s916_s18, %s916_s18, %s917_s19  }
  0x2d   : > { %p1140_p0 = scmp.ne.s32.totalorder %s1137_s26, 0 }
  0x2e   : > { %p1141_p2 = scmp.ne.s32.totalorder (!%p1140_p0), %s1138_s27, 0 }
  0x2f   : > { %175 = sbr.rel (%p1140_p0) target bundleno = 330 (0x14a), region = 32 }
  0x36   : > { %884 = dma.done.wait (%p1141_p2), [#allocation3], 1728  }
  0x37   : > { %886 = vsyncadd (%p1141_p2), [#allocation3], 4294965568  ;;  %v918_v0 = vmov 0.0   ;;  %vm919_vm0 = vmmov 0   ;;  %p203_p4 = scmp.lt.s32.totalorder %s905_s15, 1  ;;  %v786_v1 = vld [vmem:[#allocation2 + $0x24] sm:$0xff]  }
  0x38   : > { %671 = vmatprep.subr.bf16.mxu0 %v918_v0  ;;  %685 = vmatprep.subr.bf16.mxu1 %v918_v0  ;;  %v787_v2 = vld [vmem:[#allocation2] sm:$0xff]   ;;  %v788_v3 = vld [vmem:[#allocation2 + $0x2c] sm:$0xff]   ;;  %v790_v5 = vld [vmem:[#allocation2 + $0x34] sm:$0xff]   ;;  %vm244_vm1 = vsmask.f32 7424  ;;  %vm288_vm2 = vcmask 1043456  }
  0x39   : > { %681 = vmatprep.mubr.msk.bf16.mxu0 %vm919_vm0, %v918_v0  ;;  %695 = vmatprep.mubr.msk.bf16.mxu1 %vm919_vm0, %v918_v0  ;;  %s204_s26 = scalar_select %p203_p4, %s905_s15, 1  ;;  %v789_v4 = vld [vmem:[#allocation2 + $0x8] sm:$0xff]   ;;  %v791_v6 = vld [vmem:[#allocation2 + $0x10] sm:$0xff]   ;;  %v792_v7 = vld [vmem:[#allocation2 + $0x3c] sm:$0xff]   ;;  %vm284_vm3 = vcmask 588800   ;;  %vm416_vm4 = vcmask 1046528  }
  0x3a   : > { %672 = vmatpush3.bf16.msra.mxu0 %v786_v1  ;;  %686 = vmatpush3.bf16.msra.mxu1 %v787_v2  ;;  %v794_v8 = vld [vmem:[#allocation2 + $0x44] ss:$0 sps:$4 sm:$0xff]   ;;  %v793_v10 = vld [vmem:[#allocation2 + $0x18] sm:$0xff]   ;;  %v795_v12 = vld [vmem:[#allocation2 + $0x20] ss:$0 sps:$4 sm:$0xff]   ;;  %s200_s4 = sand.u32 1, %s897_s13  }
  0x3b   : > { %673 = vmatprep.subr.bf16.mxu0 %v918_v0  ;;  %s713_s27 = smul.u32 12, %s204_s26  ;;  %687 = vmatprep.subr.bf16.mxu1 %v918_v0  ;;  %v290_v17 = vsel %vm288_vm2, %v794_v8, 0  ;;  %v363_v19 = vsel %vm288_vm2, %v795_v12, 0  ;;  %v798_v22 = vld [vmem:[#allocation2 + $0x48] sm:$0xff]   ;;  %v799_v23 = vld [vmem:[#allocation2 + $0x50] sm:$0xff]   ;;  %v800_v24 = vld [vmem:[#allocation2 + $0x58] sm:$0xff]  }
  0x3c   : > { %v801_v25 = vld [vmem:[#allocation2 + $0x60] sm:$0xff]   ;;  %v802_v26 = vld [vmem:[#allocation2 + $0x68] ss:$0 sps:$4 sm:$0xff]   ;;  %s624_s5 = sshll.u32 %s200_s4, 4  ;;  %s652_s10 = sshll.u32 %s905_s15, 8 }
  0x3d   : > { %s211_s30 = scalar_lea.vmem %s1127_s0, %s713_s27  ;;  %v451_v29 = vsel %vm288_vm2, %v802_v26, 0  ;;  %v646_v42 = vld [vmem:[%s1129_s2] ss:$0 sm:$0xff]  ;;  %s202_s8 = scalar_lea.vmem [#allocation5], %s624_s5 }
  0x3e   : > { %674 = vmatpush3.bf16.msra.mxu0 %v788_v3  ;;  %688 = vmatpush3.bf16.msra.mxu1 %v789_v4  ;;  %v796_v9 = vld [vmem:[%s211_s30] sm:$0xff]   ;;  %v797_v11 = vld [vmem:[%s211_s30 + $0x8] ss:$0 sps:$4 sm:$0x11]   ;;  %s523_s9 = sshll.u32 %s202_s8, 4  ;;  %s1079_s19 = scalar_lea.hbm %s1130_s3, %s652_s10  ;;  %s1074_s9 = int_to_ptr.vmem [resolvable:$true] %s523_s9 }
  0x3f   : > { %675 = vmatprep.subr.bf16.mxu0 %v918_v0  ;;  %689 = vmatprep.subr.bf16.mxu1 %v918_v0  ;;  %v246_v13 = vshrl.u32 %v796_v9, 16  ;;  %v248_v14 = vshll.u32 %v796_v9, 16  ;;  %v253_v15 = vshll.u32 %v797_v11, 16  ;;  %v417_v27 = vrot.slane %v796_v9, 1  ;;  %s1081_s21 = scalar_lea.sflag [#allocation4], %s200_s4  ;;  %s831_s23 = scalar_lea.vmem %s1074_s9, 256 }
  0x40   : > { %v418_v28 = vrot.slane %v797_v11, 1  ;;  %p832_p8 = scmp.ne.s32.totalorder %s1074_s9, %s831_s23  ;;  %p1142_p10 = scmp.ne.s32.totalorder %s1135_s22, 0 }
  0x41   : > { %v250_v16 = vrot.slane %v248_v14, 1  ;;  %v255_v18 = vrot.slane %v253_v15, 1  ;;  %s920_s15 = smov [#allocation5]  }
  0x42   : > { %676 = vmatpush3.bf16.msra.mxu0 %v790_v5  ;;  %690 = vmatpush3.bf16.msra.mxu1 %v791_v6  ;;  %v419_v30 = vsel %vm416_vm4, %v417_v27, %v418_v28  ;;  %p833_p11 = pnand %p832_p8, %p1142_p10  ;;  %s835_s26 = sshll.u32 %s920_s15, 4  ;;  %s836_s26 = int_to_ptr.vmem [resolvable:$false] %s835_s26 }
  0x43   : > { %677 = vmatprep.subr.bf16.mxu0 %v918_v0  ;;  %691 = vmatprep.subr.bf16.mxu1 %v918_v0  ;;  %v251_v20 = vor.u32 %v250_v16, %v246_v13  ;;  %s837_s27 = scalar_lea.vmem %s836_s26, 512  ;;  %p838_p1 = scmp.lt.s32.totalorder %s1074_s9, %s836_s26 }
  0x44   : > { %p834_p13 = pneg %p833_p11  ;;  %p839_p3 = scmp.lt.s32.totalorder %s837_s27, %s831_s23 }
  0x45   : > { %v256_v21 = vsel %vm244_vm1, %v251_v20, %v255_v18 }
  0x46   : > { %678 = vmatpush3.bf16.msra.mxu0 %v792_v7  ;;  %692 = vmatpush3.bf16.msra.mxu1 %v793_v10  ;;  %p840_p5 = por %p839_p3, %p838_p1 }
  0x47   : > { %679 = vmatprep.subr.bf16.mxu0 %v918_v0  ;;  %693 = vmatprep.subr.bf16.mxu1 %v918_v0 }
  0x48   : > { %p841_p6 = pnand %p840_p5, %p834_p13 }
  0x4a   : > { %680 = vmatpush3.bf16.msra.mxu0 %v290_v17  ;;  %694 = vmatpush3.bf16.msra.mxu1 %v363_v19 }
  0x4b   : > { %699 = vmatprep.subr.bf16.mxu0 %v918_v0 }
  0x4d   : > { %682 = vmatmul.mubr.msk.bf16.vlgmr.msra.gmra.mrb[0].mxu0 %vm284_vm3, %v256_v21  ;;  %696 = vmatmul.mubr.msk.bf16.vlgmr.msra.gmra.mrb[0].mxu1 %vm284_vm3, %v796_v9 }
  0x4e   : > { %700 = vmatpush3.bf16.msra.mxu0 %v798_v22  ;;  %709 = vmatprep.mubr.msk.bf16.mxu0 %vm919_vm0, %v918_v0 }
  0x4f   : > { %701 = vmatprep.subr.bf16.mxu0 %v918_v0 }
  0x52   : > { %702 = vmatpush3.bf16.msra.mxu0 %v799_v23 }
  0x53   : > { %703 = vmatprep.subr.bf16.mxu0 %v918_v0 }
  0x56   : > { %704 = vmatpush3.bf16.msra.mxu0 %v800_v24 }
  0x57   : > { %705 = vmatprep.subr.bf16.mxu0 %v918_v0 }
  0x5a   : > { %706 = vmatpush3.bf16.msra.mxu0 %v801_v25 }
  0x5b   : > { %707 = vmatprep.subr.bf16.mxu0 %v918_v0 }
  0x5e   : > { %708 = vmatpush3.bf16.msra.mxu0 %v451_v29 }
  0x61   : > { %710 = vmatmul.mubr.msk.bf16.vlgmr.msra.gmra.mrb[4].mxu0 %vm284_vm3, %v419_v30 }
 0x120   : > { %v326_v31 = vpop.f32.mrb[0].mxu0  ;;  %v399_v32 = vpop.f32.mrb[0].mxu1 }
 0x121   : > { %v683_v33 = vpop.f32.mrb[1].mxu0  ;;  %v400_v34 = vadd.f32 %v399_v32, %v326_v31  ;;  %v697_v35 = vpop.f32.mrb[1].mxu1 }
 0x122   : > { %v329_v36 = vpop.f32.mrb[2].mxu0  ;;  %v402_v37 = vpop.f32.mrb[2].mxu1 }
 0x123   : > { %v684_v38 = vpop.f32.mrb[3].mxu0  ;;  %v403_v39 = vadd.f32 %v402_v37, %v329_v36  ;;  %v698_v40 = vpop.f32.mrb[3].mxu1 }
 0x134   : > { %v487_v41 = vpop.f32.mrb[4].mxu0 }
 0x135   : > { %v494_v43 = vadd.f32 %v487_v41, %v400_v34  ;;  %v711_v44 = vpop.f32.mrb[5].mxu0 }
 0x136   : > { %v490_v45 = vpop.f32.mrb[6].mxu0 }
 0x137   : > { %v503_v46 = vadd.f32 %v646_v42, %v494_v43  ;;  %v495_v47 = vadd.f32 %v490_v45, %v403_v39  ;;  %v712_v48 = vpop.f32.mrb[7].mxu0 }
 0x139   : > { %505 = vst [vmem:[%s202_s8] sm:$0xff] %v503_v46  ;;  %v504_v49 = vadd.f32 %v646_v42, %v495_v47 }
 0x13b   : > { %506 = vst [vmem:[%s202_s8 + $0x8] sm:$0xff] %v504_v49 }
 0x13c   : > { %844 = shalt.err (!%p841_p6)
}
 0x13d   : > { %s845_s28 = scalar_lea.hbm %s1079_s19, 256  ;;  %s849_s4 = scalar_lea.hbm %s1130_s3, 512 }
 0x13e   : > { %p846_p7 = scmp.ne.s32.totalorder %s1079_s19, %s845_s28  ;;  %p850_p0 = scmp.lt.u32.totalorder %s1079_s19, %s1130_s3 }
 0x13f   : > { %p851_p2 = scmp.lt.u32.totalorder %s849_s4, %s845_s28  ;;  %p853_p8 = scmp.lt.u32.totalorder %s845_s28, %s1079_s19 }
 0x140   : > { %p847_p9 = pnand %p846_p7, %p1142_p10 }
 0x141   : > { %p852_p4 = por %p851_p2, %p850_p0 }
 0x142   : > { %p848_p12 = pneg %p847_p9 }
 0x143   : > { %p854_p11 = por %p853_p8, %p852_p4 }
 0x145   : > { %p855_p13 = pnand %p854_p11, %p848_p12 }
 0x147   : > { %858 = shalt.err (!%p855_p13)
}
 0x148   : > { %s921_s7 = smov 128   ;;  %s922_s8 = smov 8  }
 0x149   : > { %718 = dma.vmem_to_hbm [thread:$0]  (%p1142_p10), %s1074_s9, 256, %s1079_s19, %s1081_s21, %s921_s7, %s921_s7, %s922_s8  }
 0x14a PF: > { %p730_p1 = scmp.ge.s32.totalorder %s913_s17, 2  ;;  %s538_s10 = sand.u32 1, %s893_s12  }
 0x14b   : > { %p1143_p3 = scmp.ne.s32.totalorder %s1136_s24, 0  ;;  %s539_s11 = scalar_lea.sflag [#allocation4], %s538_s10 }
 0x14d   : > { %p725_p5 = pnand %p730_p1, %p1143_p3 }
 0x14f   : > { %888 = dma.done.wait (!%p725_p5), %s539_s11, 256  }
 0x150   : > { %890 = vsyncadd (!%p725_p5), %s539_s11, 4294967040  ;;  %s17_s17 = sadd.s32 1, %s913_s17   ;;  %s1144_s12 = smov %s897_s13 }
 0x151   : > { %p14_p6 = scmp.ge.s32.totalorder %s17_s17, 4   ;;  %s1145_s13 = smov %s901_s14 }
 0x152   : > { %s1146_s14 = smov %s996_s25  ;;  %s1147_s15 = smov %s909_s16 }
 0x153   : > { %s1148_s16 = smov %s1150_s20  ;;  %16 = sbr.rel (!%p14_p6) target bundleno = 5 (0x5), region = 74 }
 0x15a   :  { %544 = vsyncpa [#allocation3], 1 }
 0x15b   :  { %546 = vsyncpa [#allocation3 + $0x1], 1 }
 0x15c   :  { %547 = vsyncpa [#allocation4], 1 }
 0x15d   :  { %549 = vsyncpa [#allocation4 + $0x1], 1 }

</bundles_post_ra>
